<compile_context>
chip_gen: v7x
topology: tpu7x:2x2x1
jax: 0.10.0
libtpu: 0.0.40
codegen_flags: <defaults>
</compile_context>

<pallas_src>
import jax
import jax.numpy as jnp
from jax.experimental import pallas as pl
from jax.experimental.pallas import tpu as pltpu


def _round_up(x, m):
    return (x + m - 1) // m * m


def make_sac_value_kernel(num_hidden_layers):
    """Builds the fused-MLP kernel for a given number of hidden layers (statically unrolled)."""

    def kernel(*refs):
        x_ref, a_ref = refs[0], refs[1]
        o_ref = refs[-1]
        p = refs[2:-1]  # (w1x, w1a, b1, [w_h, b_h]*, w_out_row, b_out_smem)

        cdt = p[0].dtype  # compute dtype for MXU operands (bf16 default, f32 optional)

        # Layer 1 with fused concat: relu(X @ W1x + a @ W1a + b1); f32 accumulation,
        # bias-add/ReLU in f32 (v5e has no bf16 VALU).
        h = (
            jnp.dot(x_ref[...].astype(cdt), p[0][...],
                    preferred_element_type=jnp.float32)
            + jnp.dot(a_ref[...].astype(cdt), p[1][...],
                      preferred_element_type=jnp.float32)
            + p[2][...]
        )
        # Cast to compute dtype right after the ReLU: halves the live (tile, 128)
        # intermediate, cutting spill vld/vst traffic (matters most on v5e: 1 vst slot).
        h = jnp.maximum(h, 0.0).astype(cdt)

        # Remaining hidden layers.
        idx = 3
        for _ in range(num_hidden_layers - 1):
            h = jnp.dot(h, p[idx][...], preferred_element_type=jnp.float32) + p[idx + 1][...]
            h = jnp.maximum(h, 0.0).astype(cdt)
            idx += 2

        # Output layer (last_hidden -> 1): VPU multiply (f32) + lane reduction (avoids a
        # nearly-empty 64x1 MXU pass); scalar bias read from SMEM. Output block (tile, 1).
        w_row = p[idx][...]            # (1, last_hidden), f32
        b_out = p[idx + 1][0, 0]       # SMEM scalar
        o_ref[...] = jnp.sum(h.astype(jnp.float32) * w_row, axis=-1, keepdims=True) + b_out

    return kernel


def prepare_params(params, input_dim, *, use_bf16=True):
    """One-time (non-jitted) weight prep, hoisted out of the per-call forward.

    Splits W1 into W1x/W1a (fuses the concat into the kernel), casts matmul weights to
    the compute dtype, keeps biases f32, and reshapes the output layer into a
    (1, last_hidden) row for the VPU reduce plus a (1, 1) SMEM scalar bias.
    """
    ws = list(params)
    w1, b1 = ws[0], ws[1]
    hidden = ws[2:-2]
    w_out, b_out = ws[-2], ws[-1]
    cdt = jnp.bfloat16 if use_bf16 else jnp.float32

    prepped = [
        w1[:input_dim].astype(cdt),          # W1x : (input_dim, H0)
        w1[input_dim:].astype(cdt),          # W1a : (act_dim,   H0)
        b1.astype(jnp.float32),
    ]
    for i in range(0, len(hidden), 2):
        prepped.append(hidden[i].astype(cdt))
        prepped.append(hidden[i + 1].astype(jnp.float32))
    prepped.append(w_out.reshape(1, -1).astype(jnp.float32))   # (1, last_hidden)
    prepped.append(b_out.reshape(1, 1).astype(jnp.float32))    # scalar bias -> SMEM
    return tuple(prepped)


def sac_value_net(X, a, prepped_params, *, tile_m=1024,
                  parallel_cores=2, min_rows_per_core=128):
    """Forward pass. prepped_params comes from prepare_params()."""
    B, input_dim = X.shape
    act_dim = a.shape[1]

    kernel_weights = list(prepped_params)
    num_hidden_layers = (len(kernel_weights) - 3) // 2  # (w1x,w1a,b1) + pairs + (w_out,b_out)

    # Balanced batch tiling: choose the step count first, then the smallest 8-aligned
    # tile that covers B in that many equal steps (near-zero padding). For non-trivial
    # batches force an even number of steps >= 2 so v7x's "parallel" grid axis gives
    # both TensorCores equal work (extra serial step is cheap on v5e/v6e).
    steps = max(pl.cdiv(B, tile_m), 1)
    if B >= parallel_cores * min_rows_per_core:
        steps = _round_up(max(steps, parallel_cores), parallel_cores)
    tile = _round_up(pl.cdiv(B, steps), 8)
    b_pad = steps * tile
    if b_pad != B:
        X = jnp.pad(X, ((0, b_pad - B), (0, 0)))
        a = jnp.pad(a, ((0, b_pad - B), (0, 0)))

    # Weights: constant index_map -> stay VMEM-resident across batch steps; X/a/out
    # blocks pipeline with the matmuls. Scalar output bias lives in SMEM.
    resident = lambda w: pl.BlockSpec(w.shape, lambda i: (0, 0))
    weight_specs = [resident(w) for w in kernel_weights[:-1]]
    weight_specs.append(pl.BlockSpec(memory_space=pltpu.MemorySpace.SMEM))

    out = pl.pallas_call(
        make_sac_value_kernel(num_hidden_layers),
        out_shape=jax.ShapeDtypeStruct((b_pad, 1), jnp.float32),
        grid=(steps,),
        in_specs=[
            pl.BlockSpec((tile, input_dim), lambda i: (i, 0)),
            pl.BlockSpec((tile, act_dim), lambda i: (i, 0)),
            *weight_specs,
        ],
        out_specs=pl.BlockSpec((tile, 1), lambda i: (i, 0)),
        compiler_params=pltpu.CompilerParams(
            dimension_semantics=("parallel",),  # v7x: shard batch steps across both TCs
        ),
    )(X, a, *kernel_weights)

    return out[:B]


def init_params(key, input_dim, output_dim, hidden_dim=(128, 64)):
    """nn.Linear-style U(-1/sqrt(fan_in), 1/sqrt(fan_in)) init.

    Weights stored (in_features, out_features); biases (1, out_features).
    """
    dims = [input_dim + output_dim] + list(hidden_dim) + [1]
    params = []
    for i in range(len(dims) - 1):
        fan_in, fan_out = dims[i], dims[i + 1]
        key, kw, kb = jax.random.split(key, 3)
        bound = 1.0 / (fan_in ** 0.5)
        w = jax.random.uniform(kw, (fan_in, fan_out), jnp.float32, -bound, bound)
        b = jax.random.uniform(kb, (1, fan_out), jnp.float32, -bound, bound)
        params.extend([w, b])
    return tuple(params)


def reference_forward(X, a, params):
    """Pure-JAX f32 reference matching the PyTorch module."""
    ws = list(params)
    h = jnp.concatenate([X, a], axis=1)
    for i in range(0, len(ws) - 2, 2):
        h = jax.nn.relu(h @ ws[i] + ws[i + 1])
    return h @ ws[-2] + ws[-1]


if __name__ == "__main__":
    input_dim = 16   # state dim
    output_dim = 4   # action dim
    hidden_dim = (128, 64)

    key = jax.random.PRNGKey(0)
    k_x, k_a, k_p, k_x2, k_a2 = jax.random.split(key, 5)
    params = init_params(k_p, input_dim, output_dim, hidden_dim)

    # One-time weight prep (hoisted out of the jitted forward).
    prepped_bf16 = prepare_params(params, input_dim, use_bf16=True)
    prepped_f32 = prepare_params(params, input_dim, use_bf16=False)

    value_fn = jax.jit(sac_value_net)

    # Small deployment-style batch (pure launch/DMA overhead regime; single grid step).
    batch = 2
    X = jax.random.normal(k_x, (batch, input_dim), jnp.float32)
    a = jax.random.normal(k_a, (batch, output_dim), jnp.float32)
    out = jax.block_until_ready(value_fn(X, a, prepped_bf16))
    ref = reference_forward(X, a, params)
    assert out.shape == (batch, 1), out.shape
    # bf16 MXU dots (f32 accumulation) -> relaxed tolerance vs. the f32 reference.
    assert jnp.allclose(out, ref, atol=2e-2, rtol=2e-2), (out, ref)

    # Full-f32 precision option (for bootstrap-target-sensitive critics): tight tolerance.
    out_f32 = jax.block_until_ready(value_fn(X, a, prepped_f32))
    assert jnp.allclose(out_f32, ref, atol=1e-4, rtol=1e-4), (out_f32, ref)

    # Training-scale batch: exercises balanced tiling (2 even steps of 600 rows, zero
    # padding) and the multi-step "parallel" batch grid.
    batch2 = 1200
    X2 = jax.random.normal(k_x2, (batch2, input_dim), jnp.float32)
    a2 = jax.random.normal(k_a2, (batch2, output_dim), jnp.float32)
    out2 = jax.block_until_ready(value_fn(X2, a2, prepped_bf16))
    ref2 = reference_forward(X2, a2, params)
    assert out2.shape == (batch2, 1), out2.shape
    assert jnp.allclose(out2, ref2, atol=2e-2, rtol=2e-2)

    print("KERNEL_OK")
</pallas_src>

<mosaic_0001>
module attributes {stable_mosaic.version = 11 : i64} {
  func.func @kernel(%arg0: i32, %arg1: memref<8x16xf32, #tpu.memory_space<vmem>>, %arg2: memref<8x4xf32, #tpu.memory_space<vmem>>, %arg3: memref<16x128xbf16, #tpu.memory_space<vmem>>, %arg4: memref<4x128xbf16, #tpu.memory_space<vmem>>, %arg5: memref<1x128xf32, #tpu.memory_space<vmem>>, %arg6: memref<128x64xbf16, #tpu.memory_space<vmem>>, %arg7: memref<1x64xf32, #tpu.memory_space<vmem>>, %arg8: memref<1x64xf32, #tpu.memory_space<vmem>>, %arg9: memref<1x1xf32, #tpu.memory_space<smem>>, %arg10: memref<8x1xf32, #tpu.memory_space<vmem>>) attributes {dimension_semantics = [#tpu.dimension_semantics<parallel>], iteration_bounds = array<i64: 1>, scalar_prefetch = 0 : i64, scratch_operands = 0 : i64, tpu.core_type = #tpu.core_type<tc>, window_params = [{transform_indices = @transform_0, window_bounds = array<i64: 8, 16>}, {transform_indices = @transform_1, window_bounds = array<i64: 8, 4>}, {pipeline_mode = #tpu.pipeline_mode<synchronous>, transform_indices = @transform_2, window_bounds = array<i64: 16, 128>}, {pipeline_mode = #tpu.pipeline_mode<synchronous>, transform_indices = @transform_3, window_bounds = array<i64: 4, 128>}, {pipeline_mode = #tpu.pipeline_mode<synchronous>, transform_indices = @transform_4, window_bounds = array<i64: 1, 128>}, {pipeline_mode = #tpu.pipeline_mode<synchronous>, transform_indices = @transform_5, window_bounds = array<i64: 128, 64>}, {pipeline_mode = #tpu.pipeline_mode<synchronous>, transform_indices = @transform_6, window_bounds = array<i64: 1, 64>}, {pipeline_mode = #tpu.pipeline_mode<synchronous>, transform_indices = @transform_7, window_bounds = array<i64: 1, 64>}, {transform_indices = @transform_8, window_bounds = array<i64: 1, 1>}, {transform_indices = @transform_9, window_bounds = array<i64: 8, 1>}]} {
    %c0 = arith.constant 0 : index
    %c0_0 = arith.constant 0 : index
    %0 = vector.load %arg1[%c0, %c0_0] : memref<8x16xf32, #tpu.memory_space<vmem>>, vector<8x16xf32>
    %1 = arith.truncf %0 : vector<8x16xf32> to vector<8x16xbf16>
    %c0_1 = arith.constant 0 : index
    %c0_2 = arith.constant 0 : index
    %2 = vector.load %arg3[%c0_1, %c0_2] : memref<16x128xbf16, #tpu.memory_space<vmem>>, vector<16x128xbf16>
    %cst = arith.constant dense<0.000000e+00> : vector<8x128xf32>
    %3 = tpu.matmul %1, %2, %cst {dimension_numbers = #tpu.dot_dimension_numbers<[1], [0], [0], [1], [0, 0, 1, 1], [], []>} : vector<8x16xbf16>, vector<16x128xbf16>, vector<8x128xf32> -> vector<8x128xf32>
    %c0_3 = arith.constant 0 : index
    %c0_4 = arith.constant 0 : index
    %4 = vector.load %arg2[%c0_3, %c0_4] : memref<8x4xf32, #tpu.memory_space<vmem>>, vector<8x4xf32>
    %5 = arith.truncf %4 : vector<8x4xf32> to vector<8x4xbf16>
    %c0_5 = arith.constant 0 : index
    %c0_6 = arith.constant 0 : index
    %6 = vector.load %arg4[%c0_5, %c0_6] : memref<4x128xbf16, #tpu.memory_space<vmem>>, vector<4x128xbf16>
    %cst_7 = arith.constant dense<0.000000e+00> : vector<8x128xf32>
    %7 = tpu.matmul %5, %6, %cst_7 {dimension_numbers = #tpu.dot_dimension_numbers<[1], [0], [0], [1], [0, 0, 1, 1], [], []>} : vector<8x4xbf16>, vector<4x128xbf16>, vector<8x128xf32> -> vector<8x128xf32>
    %8 = arith.addf %3, %7 : vector<8x128xf32>
    %c0_8 = arith.constant 0 : index
    %c0_9 = arith.constant 0 : index
    %9 = vector.load %arg5[%c0_8, %c0_9] : memref<1x128xf32, #tpu.memory_space<vmem>>, vector<1x128xf32>
    %10 = vector.broadcast %9 : vector<1x128xf32> to vector<8x128xf32>
    %11 = arith.addf %8, %10 : vector<8x128xf32>
    %cst_10 = arith.constant 0.000000e+00 : f32
    %12 = vector.broadcast %cst_10 : f32 to vector<8x128xf32>
    %13 = arith.maximumf %11, %12 : vector<8x128xf32>
    %14 = arith.truncf %13 : vector<8x128xf32> to vector<8x128xbf16>
    %c0_11 = arith.constant 0 : index
    %c0_12 = arith.constant 0 : index
    %15 = vector.load %arg6[%c0_11, %c0_12] : memref<128x64xbf16, #tpu.memory_space<vmem>>, vector<128x64xbf16>
    %cst_13 = arith.constant dense<0.000000e+00> : vector<8x64xf32>
    %16 = tpu.matmul %14, %15, %cst_13 {dimension_numbers = #tpu.dot_dimension_numbers<[1], [0], [0], [1], [0, 0, 1, 1], [], []>} : vector<8x128xbf16>, vector<128x64xbf16>, vector<8x64xf32> -> vector<8x64xf32>
    %c0_14 = arith.constant 0 : index
    %c0_15 = arith.constant 0 : index
    %17 = vector.load %arg7[%c0_14, %c0_15] : memref<1x64xf32, #tpu.memory_space<vmem>>, vector<1x64xf32>
    %18 = vector.broadcast %17 : vector<1x64xf32> to vector<8x64xf32>
    %19 = arith.addf %16, %18 : vector<8x64xf32>
    %cst_16 = arith.constant 0.000000e+00 : f32
    %20 = vector.broadcast %cst_16 : f32 to vector<8x64xf32>
    %21 = arith.maximumf %19, %20 : vector<8x64xf32>
    %22 = arith.truncf %21 : vector<8x64xf32> to vector<8x64xbf16>
    %c0_17 = arith.constant 0 : index
    %c0_18 = arith.constant 0 : index
    %23 = vector.load %arg8[%c0_17, %c0_18] : memref<1x64xf32, #tpu.memory_space<vmem>>, vector<1x64xf32>
    %c0_19 = arith.constant 0 : index
    %c0_20 = arith.constant 0 : index
    %24 = memref.load %arg9[%c0_19, %c0_20] : memref<1x1xf32, #tpu.memory_space<smem>>
    %25 = arith.extf %22 : vector<8x64xbf16> to vector<8x64xf32>
    %26 = vector.broadcast %23 : vector<1x64xf32> to vector<8x64xf32>
    %27 = arith.mulf %25, %26 : vector<8x64xf32>
    %cst_21 = arith.constant dense<0.000000e+00> : vector<8xf32>
    %28 = vector.multi_reduction <add>, %27, %cst_21 [1] : vector<8x64xf32> to vector<8xf32>
    %29 = vector.shape_cast %28 : vector<8xf32> to vector<8x1xf32>
    %30 = vector.broadcast %24 : f32 to vector<8x1xf32>
    %31 = arith.addf %29, %30 : vector<8x1xf32>
    %c0_22 = arith.constant 0 : index
    %c0_23 = arith.constant 0 : index
    %32 = vector.load %arg10[%c0_22, %c0_23] : memref<8x1xf32, #tpu.memory_space<vmem>>, vector<8x1xf32>
    tpu.vector_store %arg10[%c0_22, %c0_23], %31 {strides = array<i32>} : memref<8x1xf32, #tpu.memory_space<vmem>>, vector<8x1xf32>,
    return
  }
  func.func @transform_0(%arg0: i32) -> (i32, i32) {
    %c0_i32 = arith.constant 0 : i32
    %c0_i32_0 = arith.constant 0 : i32
    return %arg0, %c0_i32 : i32, i32
  }
  func.func @transform_1(%arg0: i32) -> (i32, i32) {
    %c0_i32 = arith.constant 0 : i32
    %c0_i32_0 = arith.constant 0 : i32
    return %arg0, %c0_i32 : i32, i32
  }
  func.func @transform_2(%arg0: i32) -> (i32, i32) {
    %c0_i32 = arith.constant 0 : i32
    %c0_i32_0 = arith.constant 0 : i32
    %c0_i32_1 = arith.constant 0 : i32
    return %c0_i32, %c0_i32_0 : i32, i32
  }
  func.func @transform_3(%arg0: i32) -> (i32, i32) {
    %c0_i32 = arith.constant 0 : i32
    %c0_i32_0 = arith.constant 0 : i32
    %c0_i32_1 = arith.constant 0 : i32
    return %c0_i32, %c0_i32_0 : i32, i32
  }
  func.func @transform_4(%arg0: i32) -> (i32, i32) {
    %c0_i32 = arith.constant 0 : i32
    %c0_i32_0 = arith.constant 0 : i32
    %c0_i32_1 = arith.constant 0 : i32
    return %c0_i32, %c0_i32_0 : i32, i32
  }
  func.func @transform_5(%arg0: i32) -> (i32, i32) {
    %c0_i32 = arith.constant 0 : i32
    %c0_i32_0 = arith.constant 0 : i32
    %c0_i32_1 = arith.constant 0 : i32
    return %c0_i32, %c0_i32_0 : i32, i32
  }
  func.func @transform_6(%arg0: i32) -> (i32, i32) {
    %c0_i32 = arith.constant 0 : i32
    %c0_i32_0 = arith.constant 0 : i32
    %c0_i32_1 = arith.constant 0 : i32
    return %c0_i32, %c0_i32_0 : i32, i32
  }
  func.func @transform_7(%arg0: i32) -> (i32, i32) {
    %c0_i32 = arith.constant 0 : i32
    %c0_i32_0 = arith.constant 0 : i32
    %c0_i32_1 = arith.constant 0 : i32
    return %c0_i32, %c0_i32_0 : i32, i32
  }
  func.func @transform_8(%arg0: i32) -> (i32, i32) {
    %c0_i32 = arith.constant 0 : i32
    %c0_i32_0 = arith.constant 0 : i32
    %c0_i32_1 = arith.constant 0 : i32
    return %c0_i32, %c0_i32_0 : i32, i32
  }
  func.func @transform_9(%arg0: i32) -> (i32, i32) {
    %c0_i32 = arith.constant 0 : i32
    %c0_i32_0 = arith.constant 0 : i32
    return %arg0, %c0_i32 : i32, i32
  }
}

</mosaic_0001>

<bundles_post_ra>
// kernel: sac_value_net.1
= control target key start
LH: loop header
LB: loop body
LE: loop exit
PB: predicated region body
PF: predicated region fallthrough
CT: control target
= control target key end

     0   :  { %vm45_vm0 = vcmask 1041408   ;;  %v354_v0 = vmov 0.0   ;;  %vm355_vm1 = vmmov 0   ;;  %vm41_vm2 = vcmask 31744   ;;  %s460_s3 = inlined_call_operand.vmem [shape: bf16[4,128], index: 3, kind: input, shape index: {}]   ;;  %s461_s1 = inlined_call_operand.vmem [shape: f32[8,4], index: 1, kind: input, shape index: {}]   ;;  %s462_s2 = inlined_call_operand.vmem [shape: bf16[16,128], index: 2, kind: input, shape index: {}]   ;;  %s463_s5 = inlined_call_operand.vmem [shape: bf16[128,64], index: 5, kind: input, shape index: {}]   ;;  %s464_s0 = inlined_call_operand.vmem [shape: f32[8,16], index: 0, kind: input, shape index: {}]   ;;  %s465_s4 = inlined_call_operand.vmem [shape: f32[1,128], index: 4, kind: input, shape index: {}]   ;;  %s466_s6 = inlined_call_operand.vmem [shape: f32[1,64], index: 6, kind: input, shape index: {}]   ;;  %s467_s7 = inlined_call_operand.vmem [shape: f32[1,64], index: 7, kind: input, shape index: {}]   ;;  %s468_s8 = inlined_call_operand.<no memory space> [shape: f32[1,1], index: 8, kind: input, shape index: {}]   ;;  %s469_s9 = inlined_call_operand.vmem [shape: f32[8,1], index: 9, kind: output, shape index: {}]  }
   0x1   :  { %311 = vmatprep.subr.bf16.mxu1 %v354_v0  ;;  %v40_v1 = vld [vmem:[%s460_s3] sm:$0x3]  ;;  %313 = vmatprep.mubr.msk.bf16.mxu1 %vm355_vm1, %v354_v0  ;;  %v347_v7 = vld [vmem:[%s463_s5 + $0x8] sm:$0xff]   ;;  %v348_v9 = vld [vmem:[%s463_s5 + $0x10] sm:$0xff]   ;;  %vm95_vm3 = vcmask 130048   ;;  %vm272_vm4 = vcmask 523264   ;;  %v276_v41 = vstv %s468_s8 }
   0x2   :  { %v38_v2 = vld [vmem:[%s461_s1] sm:$0xff]  ;;  %v47_v3 = vsel %vm45_vm0, %v40_v1, 0  ;;  %323 = vmatprep.subr.bf16.mxu0 %v354_v0  ;;  %339 = vmatprep.mubr.msk.bf16.mxu0 %vm355_vm1, %v354_v0  ;;  %v349_v11 = vld [vmem:[%s463_s5 + $0x18] sm:$0xff]   ;;  %v351_v13 = vld [vmem:[%s463_s5 + $0x28] sm:$0xff]   ;;  %vm278_vm5 = vcmask 7168  }
   0x3   :  { %v39_v4 = vpack.c.bf16 %v38_v2, %v38_v2  ;;  %v345_v5 = vld [vmem:[%s462_s2] sm:$0xff]   ;;  %312 = vmatpush3.bf16.msra.mxu1 %v47_v3  ;;  %v352_v14 = vld [vmem:[%s463_s5 + $0x30] sm:$0xff]   ;;  %v353_v15 = vld [vmem:[%s463_s5 + $0x38] sm:$0xff]  }
   0x4   :  { %v346_v6 = vld [vmem:[%s463_s5] sm:$0xff]   ;;  %317 = vmatprep.subr.bf16.mxu1 %v354_v0 }
   0x5   :  { %324 = vmatpush3.bf16.msra.mxu0 %v346_v6  ;;  %v34_v8 = vld [vmem:[%s464_s0] sm:$0xff] }
   0x6   :  { %314 = vmatmul.mubr.msk.bf16.vlgmr.msra.gmra.mrb[0].mxu1 %vm41_vm2, %v39_v4  ;;  %325 = vmatprep.subr.bf16.mxu0 %v354_v0  ;;  %v35_v10 = vpack.c.bf16 %v34_v8, %v34_v8  ;;  %v350_v12 = vld [vmem:[%s463_s5 + $0x20] sm:$0xff]  }
   0x7   :  { %318 = vmatpush3.bf16.msra.mxu1 %v345_v5  ;;  %319 = vmatprep.mubr.msk.bf16.mxu1 %vm355_vm1, %v354_v0  ;;  %v287_v21 = vld [vmem:[%s465_s4] ss:$0 sm:$0xff] }
   0x8   :  { %v288_v29 = vld [vmem:[%s466_s6] ss:$0 sm:$0xff] }
   0x9   :  { %326 = vmatpush3.bf16.msra.mxu0 %v347_v7  ;;  %v297_v37 = vld [vmem:[%s467_s7] ss:$0 sm:$0xff] }
   0xa   :  { %327 = vmatprep.subr.bf16.mxu0 %v354_v0 }
   0xd   :  { %328 = vmatpush3.bf16.msra.mxu0 %v348_v9 }
   0xe   :  { %320 = vmatmul.mubr.msk.bf16.vlgmr.msra.gmra.mrb[4].mxu1 %vm95_vm3, %v35_v10  ;;  %329 = vmatprep.subr.bf16.mxu0 %v354_v0 }
  0x11   :  { %330 = vmatpush3.bf16.msra.mxu0 %v349_v11 }
  0x12   :  { %331 = vmatprep.subr.bf16.mxu0 %v354_v0 }
  0x15   :  { %332 = vmatpush3.bf16.msra.mxu0 %v350_v12 }
  0x16   :  { %333 = vmatprep.subr.bf16.mxu0 %v354_v0 }
  0x19   :  { %334 = vmatpush3.bf16.msra.mxu0 %v351_v13 }
  0x1a   :  { %335 = vmatprep.subr.bf16.mxu0 %v354_v0 }
  0x1d   :  { %336 = vmatpush3.bf16.msra.mxu0 %v352_v14 }
  0x1e   :  { %337 = vmatprep.subr.bf16.mxu0 %v354_v0 }
  0x21   :  { %338 = vmatpush3.bf16.msra.mxu0 %v353_v15 }
  0xd9   :  { %v83_v16 = vpop.f32.mrb[0].mxu1 }
  0xda   :  { %v315_v17 = vpop.f32.mrb[1].mxu1 }
  0xdb   :  { %v86_v18 = vpop.f32.mrb[2].mxu1 }
  0xdc   :  { %v316_v19 = vpop.f32.mrb[3].mxu1 }
  0xe1   :  { %v133_v20 = vpop.f32.mrb[4].mxu1 }
  0xe2   :  { %v134_v22 = vadd.f32 %v133_v20, %v83_v16  ;;  %v321_v23 = vpop.f32.mrb[5].mxu1 }
  0xe3   :  { %v136_v24 = vpop.f32.mrb[6].mxu1 }
  0xe4   :  { %v146_v25 = vadd.f32 %v287_v21, %v134_v22  ;;  %v322_v26 = vpop.f32.mrb[7].mxu1 }
  0xe6   :  { %v147_v27 = vmax.f32 %v146_v25, 0.0 }
  0xe8   :  { %v148_v28 = vpack.c.bf16 %v147_v27, %v147_v27 }
  0xea   :  { %340 = vmatmul.mubr.bf16.vlgmr.msra.gmra.mrb[0].mxu0 %v148_v28 }
 0x1bd   :  { %v254_v30 = vpop.f32.mrb[0].mxu0 }
 0x1be   :  { %v255_v31 = vadd.f32 %v288_v29, %v254_v30  ;;  %v341_v32 = vpop.f32.mrb[1].mxu0 }
 0x1bf   :  { %v257_v33 = vpop.f32.mrb[2].mxu0 }
 0x1c0   :  { %v260_v34 = vmax.f32 %v255_v31, 0.0  ;;  %v342_v35 = vpop.f32.mrb[3].mxu0 }
 0x1c2   :  { %v261_v36 = vpack.c.bf16 %v260_v34, %v260_v34 }
 0x1c4   :  { %v264_v38 = vunpack.c.l.bf16 %v261_v36 }
 0x1c6   :  { %v271_v39 = vmul.f32 %v297_v37, %v264_v38 }
 0x1c8   :  { %v273_v40 = vsel %vm272_vm4, %v271_v39, 0.0 }
 0x1c9   :  { %274 = vadd.xlane.f32.xlu0 %v273_v40 }
 0x256   :  { %v275_v42 = vpop.xlane.xlu0 %274 }
 0x257   :  { %v277_v43 = vadd.f32 %v276_v41, %v275_v42 }
 0x259   :  { %279 = vst.msk [vmem:[%s469_s9] sm:$0xff] %vm278_vm5, %v277_v43 }

</bundles_post_ra>
